<compile_context>
chip_gen: v5e
topology: v5e:2x2
jax: 0.10.0
libtpu: 0.0.40
codegen_flags: <defaults>
</compile_context>

<pallas_src>
import functools
import math

import jax
import jax.numpy as jnp
from jax.experimental import pallas as pl
from jax.experimental.pallas import tpu as pltpu


def _round_up(v, m):
    return ((v + m - 1) // m) * m


def _layernorm_kernel(alpha_ref, bias_ref, x_ref, o_ref, *, eps, inv_h, inv_hm1,
                      approx, reread):
    # x_ref: (tm, hidden) tile in VMEM; hidden is the FULL last dim (no lane
    # padding), so the reductions see exactly the true hidden elements.

    # Pass 1: row mean.
    x = x_ref[...].astype(jnp.float32)
    mean = jnp.sum(x, axis=-1, keepdims=True) * inv_h

    # Pass 2: centered (two-pass) unbiased variance, matching torch.std numerics.
    # TODO(synk): on v7x one could offload the row sums to the idle MXU
    # (jnp.dot with a ones column) if profiling shows VALU/XLU-bound.
    if reread:
        x = x_ref[...].astype(jnp.float32)   # don't hold the f32 upcast live
    xc = x - mean
    var = jnp.sum(xc * xc, axis=-1, keepdims=True) * inv_hm1
    std = jnp.sqrt(var)

    # Per-row reciprocal on the EUP; fold alpha/mean/bias into per-row scale and
    # shift so the epilogue is one full-tile multiply-add pass.
    inv = pl.reciprocal(std + eps, approx=approx)            # (tm, 1)
    alpha = alpha_ref[0].astype(jnp.float32)
    bias = bias_ref[0].astype(jnp.float32)
    scale = alpha * inv                                      # (tm, 1)
    shift = bias - mean * scale                              # (tm, 1)

    if reread:
        x = x_ref[...].astype(jnp.float32)
    o_ref[...] = (x * scale + shift).astype(o_ref.dtype)


def _vmem_budgets():
    """Return (vmem_limit_bytes, tile_buffer_budget_bytes), generation aware."""
    cap = None
    try:
        cap = pltpu.get_tpu_info().vmem_capacity_bytes
    except Exception:
        cap = None
    if cap is None or cap <= 64 * 1024 * 1024:
        # v7x (64 MiB physical per TensorCore) or unknown -> be conservative.
        return 38 * 1024 * 1024, 24 * 1024 * 1024
    # v5e / v6e: 128 MiB physical VMEM.
    return 88 * 1024 * 1024, 56 * 1024 * 1024


def _choose_row_tile(rows, hidden, itemsize, sublane, tile_budget):
    # Per grid step Pallas double-buffers the (tm, hidden) input and output:
    #   4 * hidden * itemsize bytes/row, plus f32 intermediates
    #   (upcast + centered temp for sub-f32; one centered temp for f32).
    per_row = 4 * hidden * itemsize
    per_row += (2 if itemsize < 4 else 1) * hidden * 4
    tm = max(sublane, tile_budget // per_row)
    tm = min(tm, 1024)                          # diminishing returns past ~512-1024
    if rows > sublane:
        # Target >= 8 grid steps: both v7x cores get >= 4 steps each (per-core
        # DMA/compute overlap), and pipeline ramp is amortized on 1-TC chips.
        tm = min(tm, _round_up(pl.cdiv(rows, 8), sublane))
    tm = max(sublane, (tm // sublane) * sublane)
    tm = min(tm, _round_up(rows, sublane))
    # Prefer an even step count for megacore load balance (best effort).
    steps = pl.cdiv(rows, tm)
    if steps > 1 and steps % 2 == 1:
        tm_alt = max(sublane, _round_up(pl.cdiv(rows, steps + 1), sublane))
        if tm_alt <= tm and pl.cdiv(rows, tm_alt) % 2 == 0:
            tm = tm_alt
    return tm


def layer_normalization(x, alpha, bias, eps=1e-6, *, approx_reciprocal=False):
    """Torch-style LayerNormalization over the last axis.

    out = alpha * (x - mean) / (std + eps) + bias, std unbiased (ddof=1), eps
    added to std (not variance) -- matching the reference nn.Module exactly.
    alpha, bias: shape-(1,) scalar parameters.  Requires hidden >= 2.
    """
    orig_shape = x.shape
    hidden = orig_shape[-1]
    if hidden < 2:
        raise ValueError("hidden (last dim) must be >= 2 for unbiased std (ddof=1).")

    rows = math.prod(orig_shape[:-1]) if len(orig_shape) > 1 else 1
    x2d = x.reshape(rows, hidden)

    itemsize = jnp.dtype(x.dtype).itemsize
    sublane = {4: 8, 2: 16, 1: 32}.get(itemsize, 8)

    vmem_limit, tile_budget = _vmem_budgets()
    tm = _choose_row_tile(rows, hidden, itemsize, sublane, tile_budget)
    grid = (pl.cdiv(rows, tm),)

    kernel = functools.partial(
        _layernorm_kernel,
        eps=float(eps),
        inv_h=1.0 / hidden,
        inv_hm1=1.0 / (hidden - 1),
        approx=approx_reciprocal,
        reread=itemsize < 4,
    )

    out2d = pl.pallas_call(
        kernel,
        out_shape=jax.ShapeDtypeStruct((rows, hidden), x.dtype),
        grid_spec=pltpu.PrefetchScalarGridSpec(
            num_scalar_prefetch=0,
            grid=grid,
            in_specs=[
                pl.BlockSpec(memory_space=pltpu.MemorySpace.SMEM),  # alpha (1,)
                pl.BlockSpec(memory_space=pltpu.MemorySpace.SMEM),  # bias (1,)
                # Full hidden extent (allowed: last dim == full array dim), so no
                # lane padding and no in-kernel masking of the reduction.
                pl.BlockSpec((tm, hidden), lambda i: (i, 0)),
            ],
            out_specs=pl.BlockSpec((tm, hidden), lambda i: (i, 0)),
        ),
        compiler_params=pltpu.CompilerParams(
            dimension_semantics=("parallel",),
            vmem_limit_bytes=vmem_limit,
        ),
    )(alpha, bias, x2d)

    return out2d.reshape(orig_shape)


if __name__ == "__main__":
    key = jax.random.PRNGKey(0)
    batch, seq, hidden = 2, 8, 32
    x = jax.random.normal(key, (batch, seq, hidden), dtype=jnp.float32)

    # nn.Parameter(torch.ones(1)) / nn.Parameter(torch.zeros(1))
    alpha = jnp.ones((1,), dtype=jnp.float32)
    bias = jnp.zeros((1,), dtype=jnp.float32)
    eps = 1e-6

    def ref_fn(xx):
        mean = jnp.mean(xx, axis=-1, keepdims=True)
        h = xx.shape[-1]
        std = jnp.sqrt(jnp.sum((xx - mean) ** 2, axis=-1, keepdims=True) / (h - 1))
        return alpha[0] * (xx - mean) / (std + eps) + bias[0]

    out = jax.block_until_ready(layer_normalization(x, alpha, bias, eps=eps))
    assert jnp.allclose(out, ref_fn(x), atol=1e-5, rtol=1e-4), "mismatch vs reference"

    # Ragged rows (15) + non-multiple-of-128 hidden (96): exercises the partial
    # last row-block and the full-extent (masked-store) lane dim, no host padding.
    x2 = jax.random.normal(jax.random.PRNGKey(1), (3, 5, 96), dtype=jnp.float32)
    out2 = jax.block_until_ready(layer_normalization(x2, alpha, bias, eps=eps))
    assert jnp.allclose(out2, ref_fn(x2), atol=1e-5, rtol=1e-4), "mismatch (ragged)"

    # bf16 input: exercises the f32-upcast re-read path and bf16 sublane tiling.
    x3 = jax.random.normal(jax.random.PRNGKey(2), (4, 16, 256), dtype=jnp.bfloat16)
    out3 = jax.block_until_ready(layer_normalization(x3, alpha, bias, eps=eps))
    ref3 = ref_fn(x3.astype(jnp.float32))
    assert jnp.allclose(out3.astype(jnp.float32), ref3, atol=3e-2, rtol=3e-2), "mismatch (bf16)"

    print("KERNEL_OK")
</pallas_src>

<mosaic_0001>
module attributes {stable_mosaic.version = 11 : i64} {
  func.func @_layernorm_kernel(%arg0: i32, %arg1: memref<1xf32, #tpu.memory_space<smem>>, %arg2: memref<1xf32, #tpu.memory_space<smem>>, %arg3: memref<8x32xf32, #tpu.memory_space<vmem>>, %arg4: memref<8x32xf32, #tpu.memory_space<vmem>>) attributes {dimension_semantics = [#tpu.dimension_semantics<parallel>], iteration_bounds = array<i64: 2>, scalar_prefetch = 0 : i64, scratch_operands = 0 : i64, tpu.core_type = #tpu.core_type<tc>, window_params = [{transform_indices = @transform_0, window_bounds = array<i64: 1>}, {transform_indices = @transform_1, window_bounds = array<i64: 1>}, {transform_indices = @transform_2, window_bounds = array<i64: 8, 32>}, {transform_indices = @transform_3, window_bounds = array<i64: 8, 32>}]} {
    %c0 = arith.constant 0 : index
    %c0_0 = arith.constant 0 : index
    %0 = vector.load %arg3[%c0, %c0_0] : memref<8x32xf32, #tpu.memory_space<vmem>>, vector<8x32xf32>
    %cst = arith.constant dense<0.000000e+00> : vector<8xf32>
    %1 = vector.multi_reduction <add>, %0, %cst [1] : vector<8x32xf32> to vector<8xf32>
    %2 = vector.shape_cast %1 : vector<8xf32> to vector<8x1xf32>
    %cst_1 = arith.constant 3.125000e-02 : f32
    %3 = vector.broadcast %cst_1 : f32 to vector<8x1xf32>
    %4 = arith.mulf %2, %3 : vector<8x1xf32>
    %5 = vector.broadcast %4 : vector<8x1xf32> to vector<8x32xf32>
    %6 = arith.subf %0, %5 : vector<8x32xf32>
    %7 = arith.mulf %6, %6 : vector<8x32xf32>
    %cst_2 = arith.constant dense<0.000000e+00> : vector<8xf32>
    %8 = vector.multi_reduction <add>, %7, %cst_2 [1] : vector<8x32xf32> to vector<8xf32>
    %9 = vector.shape_cast %8 : vector<8xf32> to vector<8x1xf32>
    %cst_3 = arith.constant 0.0322580636 : f32
    %10 = vector.broadcast %cst_3 : f32 to vector<8x1xf32>
    %11 = arith.mulf %9, %10 : vector<8x1xf32>
    %12 = math.sqrt %11 : vector<8x1xf32>
    %cst_4 = arith.constant 9.99999997E-7 : f32
    %13 = vector.broadcast %cst_4 : f32 to vector<8x1xf32>
    %14 = arith.addf %12, %13 : vector<8x1xf32>
    %15 = tpu.reciprocal %14 : vector<8x1xf32> -> vector<8x1xf32>
    %c0_5 = arith.constant 0 : index
    %16 = memref.load %arg1[%c0_5] : memref<1xf32, #tpu.memory_space<smem>>
    %c0_6 = arith.constant 0 : index
    %17 = memref.load %arg2[%c0_6] : memref<1xf32, #tpu.memory_space<smem>>
    %18 = vector.broadcast %16 : f32 to vector<8x1xf32>
    %19 = arith.mulf %18, %15 : vector<8x1xf32>
    %20 = arith.mulf %4, %19 : vector<8x1xf32>
    %21 = vector.broadcast %17 : f32 to vector<8x1xf32>
    %22 = arith.subf %21, %20 : vector<8x1xf32>
    %23 = vector.broadcast %19 : vector<8x1xf32> to vector<8x32xf32>
    %24 = arith.mulf %0, %23 : vector<8x32xf32>
    %25 = vector.broadcast %22 : vector<8x1xf32> to vector<8x32xf32>
    %26 = arith.addf %24, %25 : vector<8x32xf32>
    %c0_7 = arith.constant 0 : index
    %c0_8 = arith.constant 0 : index
    %27 = vector.load %arg4[%c0_7, %c0_8] : memref<8x32xf32, #tpu.memory_space<vmem>>, vector<8x32xf32>
    tpu.vector_store %arg4[%c0_7, %c0_8], %26 {strides = array<i32>} : memref<8x32xf32, #tpu.memory_space<vmem>>, vector<8x32xf32>,
    return
  }
  func.func @transform_0(%arg0: i32) -> i32 {
    %c0_i32 = arith.constant 0 : i32
    %c0_i32_0 = arith.constant 0 : i32
    return %c0_i32 : i32
  }
  func.func @transform_1(%arg0: i32) -> i32 {
    %c0_i32 = arith.constant 0 : i32
    %c0_i32_0 = arith.constant 0 : i32
    return %c0_i32 : i32
  }
  func.func @transform_2(%arg0: i32) -> (i32, i32) {
    %c0_i32 = arith.constant 0 : i32
    %c0_i32_0 = arith.constant 0 : i32
    return %arg0, %c0_i32 : i32, i32
  }
  func.func @transform_3(%arg0: i32) -> (i32, i32) {
    %c0_i32 = arith.constant 0 : i32
    %c0_i32_0 = arith.constant 0 : i32
    return %arg0, %c0_i32 : i32, i32
  }
}

</mosaic_0001>

<bundles_post_ra>
// kernel: tpu_custom_call.1
= control target key start
LH: loop header
LB: loop body
LE: loop exit
PB: predicated region body
PF: predicated region fallthrough
CT: control target
= control target key end

     0   :  { %s645_s0 = inlined_call_operand.<no memory space> [shape: f32[1], index: 0, kind: input, shape index: {}]   ;;  %s646_s1 = inlined_call_operand.<no memory space> [shape: f32[1], index: 1, kind: input, shape index: {}]   ;;  %s647_s2 = inlined_call_operand.hbm [shape: f32[16,32], index: 2, kind: input, shape index: {}]   ;;  %s648_s3 = inlined_call_operand.hbm [shape: f32[16,32], index: 3, kind: output, shape index: {}]  }
   0x1   :  { %8 = sst [smem:[#allocation2]] %s645_s0 }
   0x2   :  { %9 = sst [smem:[#allocation3]] %s646_s1 }
   0x3   :  { %10 = vsyncpa [#allocation5], 0 }
   0x4   :  { %12 = vsyncpa [#allocation5 + $0x1], 0 }
   0x5   :  { %13 = vsyncpa [#allocation6], 0 }
   0x6   :  { %15 = vsyncpa [#allocation6 + $0x1], 0  ;;  %s511_s16 = smov 0   ;;  %s513_s17 = smov 0  }
   0x7   :  { %s515_s18 = smov 0   ;;  %s517_s19 = smov 0  }
   0x8 LB: > { %s532_s0 = sadd.s32 4294967295, %s483_s19   ;;  %s325_s1 = sadd.s32 4294967294, %s483_s19   ;;  %s483_s19 = sphi %s517_s19, %s658_s19   ;;  %s479_s18 = sphi %s515_s18, %s657_s18   ;;  %s475_s17 = sphi %s513_s17, %s656_s17   ;;  %s471_s16 = sphi %s511_s16, %s655_s16  }
   0x9   : > { %s536_s20 = sadd.s32 1, %s483_s19   ;;  %s70_s21 = sadd.s32 1, %s479_s18 }
   0xa   : > { %s67_s22 = ssub.s32 %s483_s19, %s536_s20  ;;  %p77_p0 = scmp.ne.s32.totalorder %s479_s18, %s475_s17 }
   0xb   : > { %p68_p1 = scmp.eq.s32.totalorder %s67_s22, 0  ;;  %p78_p2 = scmp.eq.s32.totalorder %s483_s19, 0 }
   0xc   : > { %p83_p3 = scmp.ne.s32.totalorder %s475_s17, %s471_s16  ;;  %p84_p4 = scmp.eq.s32.totalorder %s532_s0, 0 }
   0xd   : > { %s548_s23 = scalar_select %p68_p1, %s479_s18, %s70_s21  }
   0xe   : > { %p550_p5 = por %p78_p2, %p77_p0  ;;  %p554_p6 = por %p84_p4, %p83_p3 }
   0xf   : > { %p107_p7 = scmp.eq.s32.totalorder %s532_s0, 1  ;;  %p113_p8 = scmp.eq.s32.totalorder %s325_s1, 1 }
  0x10   : > { %p349_p10 = scmp.lt.s32.totalorder %s483_s19, 2  ;;  %s139_s28 = sand.u32 1, %s479_s18  }
  0x11   : > { %p561_p11 = por %p107_p7, %p77_p0  ;;  %p565_p12 = por %p113_p8, %p83_p3 }
  0x12   : > { %s329_s29 = sshll.u32 %s483_s19, 3  ;;  %s328_s30 = sshll.u32 %s139_s28, 3 }
  0x13   : > { %s147_s6 = scalar_lea.hbm %s647_s2, %s329_s29  ;;  %s143_s8 = scalar_lea.vmem [#allocation4], %s328_s30 }
  0x14   : > { %s149_s7 = sshll.u32 %s147_s6, 4  ;;  %s151_s9 = sshll.u32 %s143_s8, 4  ;;  %s150_s7 = int_to_ptr.hbm [resolvable:$true] %s149_s7  ;;  %s152_s9 = int_to_ptr.vmem [resolvable:$true] %s151_s9 }
  0x15   : > { %p576_p13 = pnand %p349_p10, %p550_p5  ;;  %p330_p0 = scmp.ge.s32.totalorder %s483_s19, 1 }
  0x16   : > { %p156_p1 = scmp.lt.s32.totalorder %s483_s19, 3  ;;  %s140_s11 = scalar_lea.sflag [#allocation5], %s139_s28 }
  0x17   : > { %s387_s12 = sshra.s32 %s150_s7, 4  ;;  %p391_p3 = pneg %p576_p13  ;;  %s388_s12 = int_to_ptr.hbm [resolvable:$true] %s387_s12 }
  0x18   : > { %s389_s13 = scalar_lea.hbm %s388_s12, 8  ;;  %s394_s1 = scalar_lea.hbm %s647_s2, 16 }
  0x19   : > { %p390_p2 = scmp.ne.s32.totalorder %s388_s12, %s389_s13  ;;  %p395_p5 = scmp.lt.s32.totalorder %s388_s12, %s647_s2 }
  0x1a   : > { %p396_p8 = scmp.lt.s32.totalorder %s394_s1, %s389_s13 }
  0x1b   : > { %p392_p4 = pnand %p391_p3, %p390_p2 }
  0x1c   : > { %p397_p10 = por %p396_p8, %p395_p5 }
  0x1d   : > { %p393_p7 = pneg %p392_p4 }
  0x1f   : > { %p398_p9 = pnand %p397_p10, %p393_p7 }
  0x21   : > { %401 = shalt.err (!%p398_p9)
}
  0x22   : > { %344 = dma.hbm_to_vmem [thread:$0]  (!%p576_p13), %s150_s7, 128, %s152_s9, %s140_s11  }
  0x23   : > { %p157_p2 = pnand %p330_p0, %p156_p1 }
  0x24   : > { %s597_s24 = sand.u32 (!%p157_p2), 1, %s475_s17  }
  0x25   : > { %160 = sbr.rel (%p157_p2) target bundleno = 337 (0x151), region = 32  ;;  %s331_s28 = sshll.u32 (!%p157_p2), %s597_s24, 3 }
  0x26   : > { %s163_s29 = scalar_lea.sflag (!%p157_p2), [#allocation5], %s597_s24  ;;  %s166_s30 = scalar_lea.vmem (!%p157_p2), [#allocation4], %s331_s28 }
  0x2a   : > { %462 = dma.done.wait (%p554_p6), %s163_s29, 128  }
  0x2b   : > { %464 = vsyncadd (%p554_p6), %s163_s29, 4294967168  ;;  %vm191_vm0 = vcmask 261120   ;;  %v190_v0 = vld [vmem:[%s166_s30] sm:$0xff]  ;;  %s229_s25 = sld [smem:[#allocation2]]  ;;  %s334_s5 = sshll.u32 %s532_s0, 3 }
  0x2c   : > { %v192_v1 = vsel %vm191_vm0, %v190_v0, 0.0  ;;  %s230_s4 = sld [smem:[#allocation3]]  ;;  %s250_s8 = scalar_lea.hbm %s648_s3, %s334_s5 }
  0x2d   : > { %193 = vadd.xlane.f32.xlu0 %v192_v1  ;;  %s189_s9 = scalar_lea.vmem [#allocation7], %s331_s28  ;;  %s254_s11 = sshll.u32 %s250_s8, 4  ;;  %s255_s11 = int_to_ptr.hbm [resolvable:$true] %s254_s11 }
  0x2e   : > { %s252_s10 = sshll.u32 %s189_s9, 4  ;;  %s240_s0 = scalar_lea.sflag [#allocation6], %s597_s24  ;;  %s253_s10 = int_to_ptr.vmem [resolvable:$true] %s252_s10 }
  0x2f   : > { %s431_s12 = sshra.s32 %s255_s11, 4  ;;  %s437_s1 = scalar_lea.hbm %s648_s3, 16  ;;  %s432_s12 = int_to_ptr.hbm [resolvable:$true] %s431_s12 }
  0x30   : > { %s433_s13 = scalar_lea.hbm %s432_s12, 8  ;;  %p438_p0 = scmp.lt.s32.totalorder %s432_s12, %s648_s3 }
  0x31   : > { %v231_v27 = vstv %s229_s25  ;;  %p434_p6 = scmp.ne.s32.totalorder %s432_s12, %s433_s13  ;;  %p439_p1 = scmp.lt.s32.totalorder %s437_s1, %s433_s13 }
  0x32   : > { %v234_v32 = vstv %s230_s4 }
  0x33   : > { %p435_p9 = pnand %p434_p6, %p561_p11  ;;  %p440_p3 = por %p439_p1, %p438_p0 }
  0x35   : > { %p436_p13 = pneg %p435_p9 }
  0x37   : > { %p441_p4 = pnand %p440_p3, %p436_p13 }
  0xa0   : > { %v194_v2 = vpop.xlane.xlu0 %193 }
  0xa1   : > { %v195_v3 = vmul.f32 0.03125, %v194_v2 }
  0xa3   : > { %v196_v4 = vsub.f32 %v190_v0, %v195_v3 }
  0xa5   : > { %v197_v5 = vmul.f32 %v196_v4, %v196_v4 }
  0xa7   : > { %v198_v6 = vsel %vm191_vm0, %v197_v5, 0.0 }
  0xa8   : > { %199 = vadd.xlane.f32.xlu0 %v198_v6 }
 0x11b   : > { %v200_v7 = vpop.xlane.xlu0 %199 }
 0x11c   : > { %v201_v8 = vmul.f32 0.032258064, %v200_v7 }
 0x11e   : > { %383 = vrsqrt.f32 %v201_v8  ;;  %vm209_vm1 = vcmp.eq.f32.partialorder %v201_v8, inf  ;;  %v212_v16 = vand.u32 2147483648, %v201_v8  ;;  %vm211_vm2 = vcmp.eq.f32.partialorder %v201_v8, 0.0 }
 0x124   : > { %v384_v9 = vpop.eup %383 }
 0x125   : > { %v203_v10 = vmul.f32 %v384_v9, %v201_v8 }
 0x127   : > { %v204_v11 = vmul.f32 %v384_v9, %v203_v10 }
 0x129   : > { %v205_v12 = vmul.f32 0.5, %v204_v11 }
 0x12b   : > { %v206_v13 = vsub.f32 1.5, %v205_v12 }
 0x12d   : > { %v207_v14 = vmul.f32 %v384_v9, %v206_v13 }
 0x12f   : > { %v208_v15 = vmul.f32 %v207_v14, %v201_v8 }
 0x131   : > { %v210_v17 = vsel %vm209_vm1, %v201_v8, %v208_v15 }
 0x132   : > { %v213_v18 = vsel %vm211_vm2, %v212_v16, %v210_v17 }
 0x133   : > { %v214_v19 = vadd.f32 1e-06, %v213_v18 }
 0x135   : > { %385 = vrcp.f32 %v214_v19  ;;  %v226_v23 = vand.u32 2147483648, %v214_v19  ;;  %v224_v25 = vand.u32 2147483647, %v214_v19  ;;  %vm220_vm4 = vweird.f32 %v214_v19 }
 0x137   : > { %v227_v28 = vor.u32 1.1754944e-38, %v226_v23  ;;  %vm225_vm6 = vcmp.eq.f32.partialorder %v224_v25, 8.507059e+37 }
 0x13b   : > { %v386_v20 = vpop.eup %385 }
 0x13c   : > { %v216_v21 = vmul.f32 %v386_v20, %v214_v19  ;;  %vm221_vm3 = vweird.f32 %v386_v20 }
 0x13d   : > { %vm222_vm5 = vmor %vm220_vm4, %vm221_vm3 }
 0x13e   : > { %v217_v22 = vsub.f32 1.0, %v216_v21 }
 0x140   : > { %v218_v24 = vmul.f32 %v386_v20, %v217_v22 }
 0x142   : > { %v219_v26 = vadd.f32 %v386_v20, %v218_v24 }
 0x144   : > { %v223_v29 = vsel %vm222_vm5, %v386_v20, %v219_v26 }
 0x145   : > { %v228_v30 = vsel %vm225_vm6, %v227_v28, %v223_v29 }
 0x146   : > { %v232_v31 = vmul.f32 %v231_v27, %v228_v30 }
 0x148   : > { %v233_v33 = vmul.f32 %v232_v31, %v195_v3  ;;  %v236_v35 = vmul.f32 %v232_v31, %v190_v0 }
 0x14a   : > { %v235_v34 = vsub.f32 %v234_v32, %v233_v33 }
 0x14c   : > { %v237_v36 = vadd.f32 %v236_v35, %v235_v34 }
 0x14e   : > { %238 = vst.msk [vmem:[%s189_s9] sm:$0xff] %vm191_vm0, %v237_v36 }
 0x14f   : > { %444 = shalt.err (!%p441_p4)
}
 0x150   : > { %339 = dma.vmem_to_hbm [thread:$0]  (%p561_p11), %s253_s10, 128, %s255_s11, %s240_s0  }
 0x151 PF: > { %s266_s24 = sand.u32 1, %s471_s16   ;;  %p654_p7 = scmp.ge.s32.totalorder %s483_s19, 2 }
 0x152   : > { %s267_s28 = scalar_lea.sflag [#allocation6], %s266_s24 }
 0x153   : > { %p346_p5 = pnand %p654_p7, %p565_p12 }
 0x155   : > { %p347_p8 = pneg %p346_p5 }
 0x157   : > { %466 = dma.done.wait (%p347_p8), %s267_s28, 128  }
 0x158   : > { %468 = vsyncadd (%p347_p8), %s267_s28, 4294967168  ;;  %p18_p10 = scmp.ge.s32.totalorder %s536_s20, 4   ;;  %s655_s16 = smov %s475_s17 }
 0x159   : > { %s656_s17 = smov %s479_s18  ;;  %s657_s18 = smov %s548_s23 }
 0x15a   : > { %s658_s19 = smov %s536_s20  ;;  %20 = sbr.rel (!%p18_p10) target bundleno = 8 (0x8), region = 77 }
 0x15f   :  { %273 = vsyncpa [#allocation5], 1 }
 0x160   :  { %275 = vsyncpa [#allocation5 + $0x1], 1 }
 0x161   :  { %276 = vsyncpa [#allocation6], 1 }
 0x162   :  { %278 = vsyncpa [#allocation6 + $0x1], 1 }

</bundles_post_ra>
